<compile_context>
chip_gen: v6e
topology: v6e:2x2x1
jax: 0.10.0
libtpu: 0.0.40
codegen_flags: <defaults>
</compile_context>

<pallas_src>
import functools

import jax
import jax.numpy as jnp
from jax.experimental import pallas as pl
from jax.experimental.pallas import tpu as pltpu


def _round_up(x, m):
    return (x + m - 1) // m * m


# ----------------------------------------------------------------------------
# Pallas kernel: fused (Global_mode + Standard_mode) matmul + blend + log
# ----------------------------------------------------------------------------
def _lp_kernel(m_ref, w_ref, b_ref, cv_ref, out_ref, *, alpha, i_dim, i_pad):
    m = m_ref[...]                                        # (TB, Kp)        bf16
    w = w_ref[...]                                        # (Kp, 2*i_pad)   bf16

    # one fused matmul for both heads, f32 accumulation on the MXU
    q = jnp.dot(m, w, preferred_element_type=jnp.float32) + b_ref[...]
    q = jnp.maximum(q, 0.0)                               # ReLU, (TB, 2*i_pad) f32

    qg = q[:, :i_pad]                                     # Global_mode logits pre-mask
    qs = q[:, i_pad:]                                     # Standard_mode logits pre-mask

    cv = cv_ref[...].astype(jnp.float32)                  # (TB, i_pad)
    logits_g = qg + cv                                    # + copy_vocabulary * 1
    logits_s = qs + jnp.where(cv != 0.0, 1.0, -10.0)      # + (cv!=0)*1 + (cv==0)*-10

    if i_pad != i_dim:                                    # exclude padded vocab columns
        col = jax.lax.broadcasted_iota(jnp.int32, logits_g.shape, 1)
        valid = col < i_dim
        logits_g = jnp.where(valid, logits_g, -1e30)
        logits_s = jnp.where(valid, logits_s, -1e30)

    # softmax with the blend weight folded into the (EUP) reciprocal, so the
    # alpha-scaling costs one scalar-broadcast mul per row instead of a
    # full-width VPU mul per element.
    def _scaled_softmax(x, scale):
        e = jnp.exp(x - jnp.max(x, axis=1, keepdims=True))
        inv = pl.reciprocal(jnp.sum(e, axis=1, keepdims=True), approx=True)
        return e * (scale * inv)

    score = _scaled_softmax(logits_s, alpha) + _scaled_softmax(logits_g, 1.0 - alpha)
    out_ref[...] = jnp.log(score)


def _lp_pallas(m_t, w_g, b_g, w_s, b_s, cv, *, alpha, tile_b=256):
    B, K = m_t.shape
    i_dim = w_g.shape[1]

    # alignment: lanes / MXU K to 128, batch tile to a multiple of 16 (bf16 sublanes)
    K_pad = _round_up(K, 128)
    i_pad = _round_up(i_dim, 128)
    tile_b = max(16, min(tile_b, _round_up(B, 16)))
    B_pad = _round_up(B, tile_b)

    # fused weight / bias (zero-padded); weights bf16, bias f32
    w_cat = jnp.zeros((K_pad, 2 * i_pad), jnp.float32)
    w_cat = w_cat.at[:K, :i_dim].set(w_g)
    w_cat = w_cat.at[:K, i_pad:i_pad + i_dim].set(w_s)
    w_cat = w_cat.astype(jnp.bfloat16)

    b_cat = jnp.zeros((1, 2 * i_pad), jnp.float32)
    b_cat = b_cat.at[:, :i_dim].set(b_g)
    b_cat = b_cat.at[:, i_pad:i_pad + i_dim].set(b_s)

    # streamed tensors in bf16 (halves the dominant HBM read traffic)
    m_p = jnp.zeros((B_pad, K_pad), jnp.bfloat16).at[:B, :K].set(m_t.astype(jnp.bfloat16))
    cv_p = jnp.zeros((B_pad, i_pad), jnp.bfloat16).at[:B, :i_dim].set(cv.astype(jnp.bfloat16))

    # VMEM budget: resident fused weight + double-buffered streams + f32 temporaries
    est = (2 * K_pad * (2 * i_pad) * 2          # fused bf16 weight (2 buffers)
           + 2 * (2 * i_pad) * 4                # bias
           + 2 * tile_b * K_pad * 2             # m_t tile (double-buffered)
           + 2 * tile_b * i_pad * 2             # copy_vocabulary tile
           + 2 * tile_b * i_pad * 4             # output tile
           + 6 * tile_b * (2 * i_pad) * 4)      # in-kernel f32 temporaries
    vmem_bytes = int(min(max(int(est * 1.5), 32 * 1024 * 1024), 64 * 1024 * 1024))

    kernel = functools.partial(_lp_kernel, alpha=float(alpha), i_dim=i_dim, i_pad=i_pad)

    out = pl.pallas_call(
        kernel,
        out_shape=jax.ShapeDtypeStruct((B_pad, i_pad), jnp.float32),
        grid_spec=pl.GridSpec(
            grid=(B_pad // tile_b,),
            in_specs=[
                pl.BlockSpec((tile_b, K_pad), lambda i: (i, 0)),      # m_t tile
                pl.BlockSpec((K_pad, 2 * i_pad), lambda i: (0, 0)),   # W_cat (resident)
                pl.BlockSpec((1, 2 * i_pad), lambda i: (0, 0)),       # b_cat (resident)
                pl.BlockSpec((tile_b, i_pad), lambda i: (i, 0)),      # copy_vocabulary
            ],
            out_specs=pl.BlockSpec((tile_b, i_pad), lambda i: (i, 0)),
        ),
        compiler_params=pltpu.CompilerParams(
            dimension_semantics=("parallel",),
            vmem_limit_bytes=vmem_bytes,
        ),
    )(m_p, w_cat, b_cat, cv_p)

    return out[:B, :i_dim]


# ----------------------------------------------------------------------------
# Parameter construction (deterministic, xavier-uniform-ish)
# ----------------------------------------------------------------------------
def init_params(key, i_dim, h_dim, num_rels):
    ks = jax.random.split(key, 7)

    def xavier(k, shape, gain=1.0):
        fan_in, fan_out = shape[0], shape[1]
        bound = gain * (6.0 / (fan_in + fan_out)) ** 0.5
        return jax.random.uniform(k, shape, jnp.float32, -bound, bound)

    relu_gain = 2.0 ** 0.5
    lin_bound = (1.0 / (3 * h_dim)) ** 0.5
    return {
        "ent_init_embeds": xavier(ks[0], (i_dim, h_dim), relu_gain),
        "w_relation":      xavier(ks[1], (num_rels, h_dim), relu_gain),
        "tim_init_embeds": xavier(ks[2], (1, h_dim), relu_gain),
        # nn.Linear(3h -> i_dim) weights, stored transposed as (3h, i_dim)
        "W_g": xavier(ks[3], (3 * h_dim, i_dim)),
        "b_g": jax.random.uniform(ks[4], (1, i_dim), jnp.float32, -lin_bound, lin_bound),
        "W_s": xavier(ks[5], (3 * h_dim, i_dim)),
        "b_s": jax.random.uniform(ks[6], (1, i_dim), jnp.float32, -lin_bound, lin_bound),
    }


# ----------------------------------------------------------------------------
# Forward: embedding gathers + concat in plain JAX, fused compute in Pallas
# ----------------------------------------------------------------------------
def _build_m_t(params, quadruple, entity, time_stamp):
    s = params["ent_init_embeds"][quadruple[:, 0]]            # (B, h)
    p = params["w_relation"][quadruple[:, 1]]                 # (B, h)
    o = params["ent_init_embeds"][quadruple[:, 2]]            # (B, h)

    # get_init_time: init_tim[i] = tim_init_embeds * (i+1); T = init_tim[t_idx]
    t_idx = (quadruple[:, 3] // time_stamp).astype(jnp.float32)         # (B,)
    T = params["tim_init_embeds"][0][None, :] * (t_idx[:, None] + 1.0)  # (B, h)

    if entity == "object":
        return jnp.concatenate([s, p, T], axis=1)             # (B, 3h)
    elif entity == "subject":
        return jnp.concatenate([p, o, T], axis=1)
    raise ValueError("entity must be 'object' or 'subject'")


def link_prediction_forward(params, quadruple, copy_vocabulary, entity="object",
                            alpha=0.5, time_stamp=1):
    m_t = _build_m_t(params, quadruple, entity, time_stamp)
    cv = copy_vocabulary.astype(jnp.float32)
    return _lp_pallas(m_t, params["W_g"], params["b_g"],
                      params["W_s"], params["b_s"], cv, alpha=alpha)


# Plain-JAX reference (same bf16 precision policy for the matmul inputs)
def _reference(params, quadruple, copy_vocabulary, entity, alpha, time_stamp):
    m_t = _build_m_t(params, quadruple, entity, time_stamp).astype(jnp.bfloat16)
    wg = params["W_g"].astype(jnp.bfloat16)
    ws = params["W_s"].astype(jnp.bfloat16)
    cv = copy_vocabulary.astype(jnp.float32)
    qg = jax.nn.relu(jnp.dot(m_t, wg, preferred_element_type=jnp.float32) + params["b_g"])
    qs = jax.nn.relu(jnp.dot(m_t, ws, preferred_element_type=jnp.float32) + params["b_s"])
    score_g = jax.nn.softmax(qg + cv, axis=1)
    score_s = jax.nn.softmax(qs + jnp.where(cv != 0.0, 1.0, -10.0), axis=1)
    return jnp.log(score_s * alpha + score_g * (1.0 - alpha))


if __name__ == "__main__":
    # Small shapes: i_dim (num entities) = 128, h_dim = 32, num_rels = 8,
    # num_times = 16, batch = 8.
    i_dim, h_dim, num_rels, num_times, B = 128, 32, 8, 16, 8
    alpha, time_stamp = 0.5, 1

    key = jax.random.PRNGKey(0)
    k_par, k_q, k_cv = jax.random.split(key, 3)
    params = init_params(k_par, i_dim, h_dim, num_rels)

    kq = jax.random.split(k_q, 4)
    quadruple = jnp.stack([
        jax.random.randint(kq[0], (B,), 0, i_dim),       # subject
        jax.random.randint(kq[1], (B,), 0, num_rels),    # relation
        jax.random.randint(kq[2], (B,), 0, i_dim),       # object
        jax.random.randint(kq[3], (B,), 0, num_times),   # time
    ], axis=1).astype(jnp.int32)                          # (B, 4)

    # copy vocabulary: sparse 0/1 mask over entities
    copy_vocabulary = (jax.random.uniform(k_cv, (B, i_dim)) < 0.1).astype(jnp.float32)

    out = link_prediction_forward(params, quadruple, copy_vocabulary,
                                  entity="object", alpha=alpha, time_stamp=time_stamp)
    out = jax.block_until_ready(out)

    ref = _reference(params, quadruple, copy_vocabulary, "object", alpha, time_stamp)
    assert out.shape == (B, i_dim)
    assert bool(jnp.all(jnp.isfinite(out))), "non-finite output"
    # tolerance covers MXU accumulation-order and approx-reciprocal differences
    # (bf16 input quantization is identical in kernel and reference)
    assert jnp.allclose(out, ref, atol=5e-3, rtol=1e-3), "mismatch vs reference"

    print("KERNEL_OK")
</pallas_src>

<mosaic_0001>
module attributes {stable_mosaic.version = 11 : i64} {
  func.func @_lp_kernel(%arg0: i32, %arg1: memref<16x128xbf16, #tpu.memory_space<vmem>>, %arg2: memref<128x256xbf16, #tpu.memory_space<vmem>>, %arg3: memref<1x256xf32, #tpu.memory_space<vmem>>, %arg4: memref<16x128xbf16, #tpu.memory_space<vmem>>, %arg5: memref<16x128xf32, #tpu.memory_space<vmem>>) attributes {dimension_semantics = [#tpu.dimension_semantics<parallel>], iteration_bounds = array<i64: 1>, scalar_prefetch = 0 : i64, scratch_operands = 0 : i64, tpu.core_type = #tpu.core_type<tc>, window_params = [{transform_indices = @transform_0, window_bounds = array<i64: 16, 128>}, {pipeline_mode = #tpu.pipeline_mode<synchronous>, transform_indices = @transform_1, window_bounds = array<i64: 128, 256>}, {pipeline_mode = #tpu.pipeline_mode<synchronous>, transform_indices = @transform_2, window_bounds = array<i64: 1, 256>}, {transform_indices = @transform_3, window_bounds = array<i64: 16, 128>}, {transform_indices = @transform_4, window_bounds = array<i64: 16, 128>}]} {
    %c0 = arith.constant 0 : index
    %c0_0 = arith.constant 0 : index
    %0 = vector.load %arg1[%c0, %c0_0] : memref<16x128xbf16, #tpu.memory_space<vmem>>, vector<16x128xbf16>
    %c0_1 = arith.constant 0 : index
    %c0_2 = arith.constant 0 : index
    %1 = vector.load %arg2[%c0_1, %c0_2] : memref<128x256xbf16, #tpu.memory_space<vmem>>, vector<128x256xbf16>
    %cst = arith.constant dense<0.000000e+00> : vector<16x256xf32>
    %2 = tpu.matmul %0, %1, %cst {dimension_numbers = #tpu.dot_dimension_numbers<[1], [0], [0], [1], [0, 0, 1, 1], [], []>} : vector<16x128xbf16>, vector<128x256xbf16>, vector<16x256xf32> -> vector<16x256xf32>
    %c0_3 = arith.constant 0 : index
    %c0_4 = arith.constant 0 : index
    %3 = vector.load %arg3[%c0_3, %c0_4] : memref<1x256xf32, #tpu.memory_space<vmem>>, vector<1x256xf32>
    %4 = vector.broadcast %3 : vector<1x256xf32> to vector<16x256xf32>
    %5 = arith.addf %2, %4 : vector<16x256xf32>
    %cst_5 = arith.constant 0.000000e+00 : f32
    %6 = vector.broadcast %cst_5 : f32 to vector<16x256xf32>
    %7 = arith.maximumf %5, %6 : vector<16x256xf32>
    %8 = vector.extract_strided_slice %7 {offsets = [0, 0], sizes = [16, 128], strides = [1, 1]} : vector<16x256xf32> to vector<16x128xf32>
    %9 = vector.extract_strided_slice %7 {offsets = [0, 128], sizes = [16, 128], strides = [1, 1]} : vector<16x256xf32> to vector<16x128xf32>
    %c0_6 = arith.constant 0 : index
    %c0_7 = arith.constant 0 : index
    %10 = vector.load %arg4[%c0_6, %c0_7] : memref<16x128xbf16, #tpu.memory_space<vmem>>, vector<16x128xbf16>
    %11 = arith.extf %10 : vector<16x128xbf16> to vector<16x128xf32>
    %12 = arith.addf %8, %11 : vector<16x128xf32>
    %cst_8 = arith.constant 0.000000e+00 : f32
    %13 = vector.broadcast %cst_8 : f32 to vector<16x128xf32>
    %14 = arith.cmpf one, %11, %13 : vector<16x128xf32>
    %cst_9 = arith.constant 1.000000e+00 : f32
    %cst_10 = arith.constant -1.000000e+01 : f32
    %15 = vector.broadcast %cst_9 : f32 to vector<16x128xf32>
    %16 = vector.broadcast %cst_10 : f32 to vector<16x128xf32>
    %17 = arith.select %14, %15, %16 : vector<16x128xi1>, vector<16x128xf32>
    %18 = arith.addf %9, %17 : vector<16x128xf32>
    %cst_11 = arith.constant dense<0xFF800000> : vector<16xf32>
    %19 = vector.multi_reduction <maximumf>, %18, %cst_11 [1] : vector<16x128xf32> to vector<16xf32>
    %20 = vector.shape_cast %19 : vector<16xf32> to vector<16x1xf32>
    %21 = vector.broadcast %20 : vector<16x1xf32> to vector<16x128xf32>
    %22 = arith.subf %18, %21 : vector<16x128xf32>
    %23 = math.exp %22 : vector<16x128xf32>
    %cst_12 = arith.constant dense<0.000000e+00> : vector<16xf32>
    %24 = vector.multi_reduction <add>, %23, %cst_12 [1] : vector<16x128xf32> to vector<16xf32>
    %25 = vector.shape_cast %24 : vector<16xf32> to vector<16x1xf32>
    %26 = tpu.reciprocal %25 {approx = true} : vector<16x1xf32> -> vector<16x1xf32>
    %cst_13 = arith.constant 5.000000e-01 : f32
    %27 = vector.broadcast %cst_13 : f32 to vector<16x1xf32>
    %28 = arith.mulf %27, %26 : vector<16x1xf32>
    %29 = vector.broadcast %28 : vector<16x1xf32> to vector<16x128xf32>
    %30 = arith.mulf %23, %29 : vector<16x128xf32>
    %cst_14 = arith.constant dense<0xFF800000> : vector<16xf32>
    %31 = vector.multi_reduction <maximumf>, %12, %cst_14 [1] : vector<16x128xf32> to vector<16xf32>
    %32 = vector.shape_cast %31 : vector<16xf32> to vector<16x1xf32>
    %33 = vector.broadcast %32 : vector<16x1xf32> to vector<16x128xf32>
    %34 = arith.subf %12, %33 : vector<16x128xf32>
    %35 = math.exp %34 : vector<16x128xf32>
    %cst_15 = arith.constant dense<0.000000e+00> : vector<16xf32>
    %36 = vector.multi_reduction <add>, %35, %cst_15 [1] : vector<16x128xf32> to vector<16xf32>
    %37 = vector.shape_cast %36 : vector<16xf32> to vector<16x1xf32>
    %38 = tpu.reciprocal %37 {approx = true} : vector<16x1xf32> -> vector<16x1xf32>
    %cst_16 = arith.constant 5.000000e-01 : f32
    %39 = vector.broadcast %cst_16 : f32 to vector<16x1xf32>
    %40 = arith.mulf %39, %38 : vector<16x1xf32>
    %41 = vector.broadcast %40 : vector<16x1xf32> to vector<16x128xf32>
    %42 = arith.mulf %35, %41 : vector<16x128xf32>
    %43 = arith.addf %30, %42 : vector<16x128xf32>
    %44 = math.log %43 : vector<16x128xf32>
    %c0_17 = arith.constant 0 : index
    %c0_18 = arith.constant 0 : index
    %45 = vector.load %arg5[%c0_17, %c0_18] : memref<16x128xf32, #tpu.memory_space<vmem>>, vector<16x128xf32>
    tpu.vector_store %arg5[%c0_17, %c0_18], %44 {strides = array<i32>} : memref<16x128xf32, #tpu.memory_space<vmem>>, vector<16x128xf32>,
    return
  }
  func.func @transform_0(%arg0: i32) -> (i32, i32) {
    %c0_i32 = arith.constant 0 : i32
    %c0_i32_0 = arith.constant 0 : i32
    return %arg0, %c0_i32 : i32, i32
  }
  func.func @transform_1(%arg0: i32) -> (i32, i32) {
    %c0_i32 = arith.constant 0 : i32
    %c0_i32_0 = arith.constant 0 : i32
    %c0_i32_1 = arith.constant 0 : i32
    return %c0_i32, %c0_i32_0 : i32, i32
  }
  func.func @transform_2(%arg0: i32) -> (i32, i32) {
    %c0_i32 = arith.constant 0 : i32
    %c0_i32_0 = arith.constant 0 : i32
    %c0_i32_1 = arith.constant 0 : i32
    return %c0_i32, %c0_i32_0 : i32, i32
  }
  func.func @transform_3(%arg0: i32) -> (i32, i32) {
    %c0_i32 = arith.constant 0 : i32
    %c0_i32_0 = arith.constant 0 : i32
    return %arg0, %c0_i32 : i32, i32
  }
  func.func @transform_4(%arg0: i32) -> (i32, i32) {
    %c0_i32 = arith.constant 0 : i32
    %c0_i32_0 = arith.constant 0 : i32
    return %arg0, %c0_i32 : i32, i32
  }
}

</mosaic_0001>

<bundles_post_ra>
// kernel: tpu_custom_call.1
= control target key start
LH: loop header
LB: loop body
LE: loop exit
PB: predicated region body
PF: predicated region fallthrough
CT: control target
= control target key end

     0   :  { %9 = vsyncpa [#allocation3], 0  ;;  %s519_s0 = inlined_call_operand.hbm [shape: bf16[16,128], index: 0, kind: input, shape index: {}]   ;;  %s520_s1 = inlined_call_operand.hbm [shape: bf16[128,256], index: 1, kind: input, shape index: {}]   ;;  %s521_s2 = inlined_call_operand.vmem [shape: f32[1,256], index: 2, kind: input, shape index: {}]   ;;  %s522_s3 = inlined_call_operand.hbm [shape: bf16[16,128], index: 3, kind: input, shape index: {}]   ;;  %s523_s4 = inlined_call_operand.hbm [shape: f32[16,128], index: 4, kind: output, shape index: {}]  }
   0x1   :  { %10 = vsyncpa [#allocation6], 0 }
   0x2   :  { %11 = vsyncpa [#allocation4], 0  ;;  %s463_s15 = smov [#allocation5]  }
   0x3   :  { %s29_s16 = sshll.u32 %s463_s15, 4  ;;  %s30_s16 = int_to_ptr.vmem [resolvable:$true] %s29_s16 }
   0x4   :  { %s385_s17 = scalar_lea.vmem %s30_s16, 2048  ;;  %p390_p1 = scmp.lt.s32.totalorder %s30_s16, %s30_s16 }
   0x5   :  { %p386_p0 = scmp.ne.s32.totalorder %s30_s16, %s385_s17  ;;  %p391_p2 = scmp.lt.s32.totalorder %s385_s17, %s385_s17 }
   0x7   :  { %p392_p3 = por %p391_p2, %p390_p1 }
   0x9   :  { %p393_p4 = pnand %p392_p3, %p386_p0 }
   0xb   :  { %396 = shalt.err (!%p393_p4)
}
   0xc   :  { %s464_s18 = smov 128   ;;  %s465_s19 = smov 8  }
   0xd   :  { %35 = dma.hbm_to_vmem [thread:$0]  %s520_s1, 2048, %s30_s16, [#allocation6], %s464_s18, %s464_s18, %s465_s19  }
   0xe   :  { %s466_s22 = smov [#allocation2]  }
   0xf   :  { %s17_s23 = sshll.u32 %s466_s22, 4  ;;  %s18_s23 = int_to_ptr.vmem [resolvable:$true] %s17_s23 }
  0x10   :  { %s405_s24 = scalar_lea.vmem %s18_s23, 128  ;;  %p410_p6 = scmp.lt.s32.totalorder %s18_s23, %s18_s23 }
  0x11   :  { %p406_p5 = scmp.ne.s32.totalorder %s18_s23, %s405_s24  ;;  %p411_p7 = scmp.lt.s32.totalorder %s405_s24, %s405_s24 }
  0x13   :  { %p412_p8 = por %p411_p7, %p410_p6 }
  0x15   :  { %p413_p9 = pnand %p412_p8, %p406_p5 }
  0x17   :  { %416 = shalt.err (!%p413_p9)
}
  0x18   :  { %s467_s25 = smov 64   ;;  %s468_s26 = smov 4  }
  0x19   :  { %23 = dma.hbm_to_vmem [thread:$0]  %s519_s0, 128, %s18_s23, [#allocation3], %s467_s25, %s467_s25, %s468_s26  }
  0x1a   :  { %s469_s29 = smov [#allocation7]  }
  0x1b   :  { %s43_s30 = sshll.u32 %s469_s29, 4  ;;  %s44_s30 = int_to_ptr.vmem [resolvable:$true] %s43_s30 }
  0x1c   :  { %s425_s1 = scalar_lea.vmem %s44_s30, 128  ;;  %p430_p11 = scmp.lt.s32.totalorder %s44_s30, %s44_s30 }
  0x1d   :  { %p426_p10 = scmp.ne.s32.totalorder %s44_s30, %s425_s1  ;;  %p431_p12 = scmp.lt.s32.totalorder %s425_s1, %s425_s1 }
  0x1f   :  { %p432_p13 = por %p431_p12, %p430_p11 }
  0x21   :  { %p433_p0 = pnand %p432_p13, %p426_p10 }
  0x23   :  { %436 = shalt.err (!%p433_p0)
}
  0x24   :  { %49 = dma.hbm_to_vmem [thread:$0]  %s522_s3, 128, %s44_s30, [#allocation6], %s467_s25, %s467_s25, %s468_s26  }
  0x25   :  { %457 = dma.done.wait [#allocation3], 128  }
  0x26   :  { %458 = vsyncadd [#allocation3], 4294967168 }
  0x27   :  { %459 = dma.done.wait [#allocation6], 2176  }
  0x28   :  { %460 = vsyncadd [#allocation6], 4294965120  ;;  %v470_v0 = vmov 0   ;;  %v332_v1 = vld [vmem:[#allocation5 + $0x74] ss:$8 sps:$4 sm:$0xff]   ;;  %v80_v18 = vlaneseq  ;;  %v319_v22 = vld [vmem:[#allocation7] sm:$0xff]  }
  0x29   :  { %208 = vmatprep.mubr.bf16.mxu0 %v470_v0  ;;  %v334_v2 = vld [vmem:[#allocation5 + $0x70] ss:$8 sps:$4 sm:$0xff]   ;;  %176 = vmatprep.subr.bf16.mxu0 %v332_v1  ;;  %v335_v3 = vld [vmem:[#allocation5 + $0x64] ss:$8 sps:$4 sm:$0xff]   ;;  %v337_v4 = vld [vmem:[#allocation5 + $0x60] ss:$8 sps:$4 sm:$0xff]   ;;  %v320_v25 = vunpack.c.l.bf16 %v319_v22  ;;  %v321_v29 = vunpack.c.h.bf16 %v319_v22 }
  0x2a   :  { %177 = vmatpush1.bf16.msra.mxu0 %v334_v2  ;;  %v338_v5 = vld [vmem:[#allocation5 + $0x54] ss:$8 sps:$4 sm:$0xff]   ;;  %v340_v6 = vld [vmem:[#allocation5 + $0x50] ss:$8 sps:$4 sm:$0xff]   ;;  %v341_v7 = vld [vmem:[#allocation5 + $0x44] ss:$8 sps:$4 sm:$0xff]  }
  0x2b   :  { %178 = vmatprep.subr.bf16.mxu0 %v335_v3  ;;  %v343_v8 = vld [vmem:[#allocation5 + $0x40] ss:$8 sps:$4 sm:$0xff]   ;;  %v344_v9 = vld [vmem:[#allocation5 + $0x34] ss:$8 sps:$4 sm:$0xff]   ;;  %v346_v10 = vld [vmem:[#allocation5 + $0x30] ss:$8 sps:$4 sm:$0xff]  }
  0x2c   :  { %v347_v11 = vld [vmem:[#allocation5 + $0x24] ss:$8 sps:$4 sm:$0xff]   ;;  %v349_v12 = vld [vmem:[#allocation5 + $0x20] ss:$8 sps:$4 sm:$0xff]   ;;  %v350_v13 = vld [vmem:[#allocation5 + $0x14] ss:$8 sps:$4 sm:$0xff]  }
  0x2d   :  { %v352_v14 = vld [vmem:[#allocation5 + $0x10] ss:$8 sps:$4 sm:$0xff]   ;;  %v353_v15 = vld [vmem:[#allocation5 + $0x4] ss:$8 sps:$4 sm:$0xff]   ;;  %v355_v16 = vld [vmem:[#allocation5] ss:$8 sps:$4 sm:$0xff]  }
  0x2e   :  { %179 = vmatpush1.bf16.msra.mxu0 %v337_v4  ;;  %v356_v17 = vld [vmem:[#allocation2] sm:$0xff]   ;;  %v81_v19 = vshrl.u32 %v80_v18, 7  ;;  %vm229_vm0 = vcmp.ne.f32.partialorder %v320_v25, 0.0  ;;  %v471_v34 = vmov -10.0   ;;  %vm230_vm1 = vcmp.ne.f32.partialorder %v321_v29, 0.0 }
  0x2f   :  { %180 = vmatprep.subr.bf16.mxu0 %v338_v5  ;;  %v78_v21 = vld [vmem:[%s521_s2] sm:$0x3]  ;;  %v231_v35 = vsel %vm229_vm0, 1.0, %v471_v34  ;;  %v232_v43 = vsel %vm230_vm1, 1.0, %v471_v34  ;;  %s472_s2 = smov [#allocation8]  }
  0x30   :  { %v82_v20 = vsub.s32 0, %v81_v19  ;;  %v86_v23 = vsub.s32 1, %v81_v19  ;;  %s288_s7 = sshll.u32 %s472_s2, 4  ;;  %s289_s7 = int_to_ptr.vmem [resolvable:$true] %s288_s7 }
  0x31   :  { %s437_s8 = scalar_lea.vmem %s289_s7, 256  ;;  %p442_p2 = scmp.lt.s32.totalorder %s289_s7, %s289_s7 }
  0x32   :  { %181 = vmatpush1.bf16.msra.mxu0 %v340_v6  ;;  %v83_v24 = vrot.slane %v78_v21, %v82_v20  ;;  %v87_v26 = vrot.slane %v78_v21, %v86_v23  ;;  %p438_p1 = scmp.ne.s32.totalorder %s289_s7, %s437_s8  ;;  %p443_p3 = scmp.lt.s32.totalorder %s437_s8, %s437_s8 }
  0x33   :  { %182 = vmatprep.subr.bf16.mxu0 %v341_v7 }
  0x34   :  { %p444_p4 = por %p443_p3, %p442_p2 }
  0x36   :  { %183 = vmatpush1.bf16.msra.mxu0 %v343_v8  ;;  %p445_p5 = pnand %p444_p4, %p438_p1 }
  0x37   :  { %184 = vmatprep.subr.bf16.mxu0 %v344_v9 }
  0x3a   :  { %185 = vmatpush1.bf16.msra.mxu0 %v346_v10 }
  0x3b   :  { %186 = vmatprep.subr.bf16.mxu0 %v347_v11 }
  0x3e   :  { %187 = vmatpush1.bf16.msra.mxu0 %v349_v12 }
  0x3f   :  { %188 = vmatprep.subr.bf16.mxu0 %v350_v13 }
  0x42   :  { %189 = vmatpush1.bf16.msra.mxu0 %v352_v14 }
  0x43   :  { %190 = vmatprep.subr.bf16.mxu0 %v353_v15 }
  0x46   :  { %191 = vmatpush1.bf16.msra.mxu0 %v355_v16 }
  0x49   :  { %209 = vmatmul.mubr.bf16.vlgmr.msra.gmra.mxu0 %v356_v17 }
 0x109   :  { %v210_v27 = vpop.f32.mrf.mxu0 }
 0x10a   :  { %v211_v28 = vadd.f32 %v210_v27, %v83_v24 }
 0x10b   :  { %v212_v30 = vpop.f32.mrf.mxu0 }
 0x10c   :  { %v219_v31 = vmax.f32 %v211_v28, 0.0  ;;  %v213_v32 = vadd.f32 %v212_v30, %v87_v26 }
 0x10d   :  { %v214_v33 = vpop.f32.mrf.mxu0 }
 0x10e   :  { %v220_v36 = vmax.f32 %v213_v32, 0.0  ;;  %v215_v37 = vadd.f32 %v214_v33, %v83_v24  ;;  %v227_v38 = vadd.f32 %v320_v25, %v219_v31 }
 0x10f   :  { %v216_v39 = vpop.f32.mrf.mxu0 }
 0x110   :  { %v221_v40 = vmax.f32 %v215_v37, 0.0  ;;  %v217_v41 = vadd.f32 %v216_v39, %v87_v26  ;;  %255 = vmax.xlane.f32.xlu1 %v227_v38  ;;  %v233_v42 = vadd.f32 %v231_v35, %v220_v36 }
 0x112   :  { %v222_v44 = vmax.f32 %v217_v41, 0.0  ;;  %235 = vmax.xlane.f32.xlu0 %v233_v42  ;;  %v228_v45 = vadd.f32 %v321_v29, %v221_v40 }
 0x114   :  { %257 = vmax.xlane.f32.xlu1 %v228_v45  ;;  %v234_v46 = vadd.f32 %v232_v43, %v222_v44 }
 0x116   :  { %237 = vmax.xlane.f32.xlu0 %v234_v46 }
 0x199   :  { %v256_v47 = vpop.xlane.xlu1 %255 }
 0x19a   :  { %v259_v48 = vsub.f32 %v227_v38, %v256_v47 }
 0x19b   :  { %v236_v49 = vpop.xlane.xlu0 %235 }
 0x19c   :  { %v239_v50 = vsub.f32 %v233_v42, %v236_v49  ;;  %v261_v53 = vmul.f32 1.442695, %v259_v48 }
 0x19d   :  { %v258_v51 = vpop.xlane.xlu1 %257 }
 0x19e   :  { %v241_v52 = vmul.f32 1.442695, %v239_v50  ;;  %v260_v55 = vsub.f32 %v228_v45, %v258_v51 }
 0x19f   :  { %v238_v54 = vpop.xlane.xlu0 %237 }
 0x1a0   :  { %357 = vpow2.f32 %v241_v52  ;;  %v240_v56 = vsub.f32 %v234_v46, %v238_v54  ;;  %v263_v58 = vmul.f32 1.442695, %v260_v55 }
 0x1a1   :  { %359 = vpow2.f32 %v261_v53 }
 0x1a2   :  { %v243_v57 = vmul.f32 1.442695, %v240_v56 }
 0x1a4   :  { %361 = vpow2.f32 %v243_v57 }
 0x1a5   :  { %363 = vpow2.f32 %v263_v58 }
 0x1ad   :  { %v358_v59 = vpop.eup %357 }
 0x1ae   :  { %245 = vadd.xlane.f32.xlu0 %v358_v59  ;;  %v360_v60 = vpop.eup %359 }
 0x1b1   :  { %v362_v61 = vpop.eup %361 }
 0x1b2   :  { %247 = vadd.xlane.f32.xlu1 %v362_v61  ;;  %265 = vadd.xlane.f32.xlu0 %v360_v60  ;;  %v364_v62 = vpop.eup %363 }
 0x1b6   :  { %267 = vadd.xlane.f32.xlu1 %v364_v62 }
 0x237   :  { %v246_v63 = vpop.xlane.xlu0 %245 }
 0x238   :  { %365 = vrcp.f32 %v246_v63 }
 0x23b   :  { %v266_v0 = vpop.xlane.xlu0 %265  ;;  %v248_v1 = vpop.xlane.xlu1 %247 }
 0x23c   :  { %367 = vrcp.f32 %v266_v0 }
 0x23d   :  { %369 = vrcp.f32 %v248_v1 }
 0x23f   :  { %v268_v2 = vpop.xlane.xlu1 %267 }
 0x240   :  { %371 = vrcp.f32 %v268_v2 }
 0x245   :  { %v366_v3 = vpop.eup %365 }
 0x246   :  { %v251_v4 = vmul.f32 0.5, %v366_v3 }
 0x248   :  { %v253_v8 = vmul.f32 %v358_v59, %v251_v4 }
 0x249   :  { %v368_v5 = vpop.eup %367 }
 0x24a   :  { %v370_v6 = vpop.eup %369  ;;  %v271_v7 = vmul.f32 0.5, %v368_v5 }
 0x24b   :  { %v252_v10 = vmul.f32 0.5, %v370_v6 }
 0x24c   :  { %v273_v9 = vmul.f32 %v360_v60, %v271_v7 }
 0x24d   :  { %v372_v11 = vpop.eup %371  ;;  %v254_v14 = vmul.f32 %v362_v61, %v252_v10 }
 0x24e   :  { %v275_v12 = vadd.f32 %v273_v9, %v253_v8  ;;  %v272_v13 = vmul.f32 0.5, %v372_v11 }
 0x250   :  { %373 = vlog2.f32 %v275_v12  ;;  %v274_v15 = vmul.f32 %v364_v62, %v272_v13 }
 0x252   :  { %v276_v16 = vadd.f32 %v274_v15, %v254_v14 }
 0x254   :  { %375 = vlog2.f32 %v276_v16 }
 0x25d   :  { %v374_v17 = vpop.eup %373 }
 0x25e   :  { %v278_v18 = vmul.f32 0.6931472, %v374_v17 }
 0x260   :  { %281 = vst [vmem:[#allocation8] sm:$0xff] %v278_v18 }
 0x261   :  { %v376_v19 = vpop.eup %375 }
 0x262   :  { %v280_v20 = vmul.f32 0.6931472, %v376_v19 }
 0x264   :  { %282 = vst [vmem:[#allocation8 + $0x8] sm:$0xff] %v280_v20 }
 0x265   :  { %448 = shalt.err (!%p445_p5)
}
 0x266   :  { %294 = dma.vmem_to_hbm [thread:$0]  %s289_s7, 256, %s523_s4, [#allocation4], %s464_s18, %s464_s18, %s465_s19  }
 0x267   :  { %461 = dma.done.wait [#allocation4], 256  }
 0x268   :  { %462 = vsyncadd [#allocation4], 4294967040 }
 0x269   :  { %298 = vsyncpa [#allocation3], 1 }
 0x26a   :  { %299 = vsyncpa [#allocation6], 1 }
 0x26b   :  { %300 = vsyncpa [#allocation4], 1 }

</bundles_post_ra>
